<compile_context>
chip_gen: v6e
topology: v6e:2x2x1
jax: 0.10.0
libtpu: 0.0.40
codegen_flags: <defaults>
</compile_context>

<pallas_src>
import functools

import jax
import jax.numpy as jnp
from jax.experimental import pallas as pl
from jax.experimental.pallas import tpu as pltpu


def _round_up(n, m):
    return ((n + m - 1) // m) * m


# --------------------------------------------------------------------------- #
# Kernel (everything transposed so the batch lives on the lane axis):
#   xT  : (S,  tb)   input block, batch tile on lanes
#   w1T : (Hp, S)    layer-1 weights, hidden padded to a multiple of 128
#   b1  : (Hp, 1)
#   whT : (R,  Hp)   fused [mu; std] head weights, R = round_up(2A, 8)
#   bh  : (R,  1)
#   out : (R,  tb)   rows [0,A) -> 2*tanh, rows [A,R) -> softplus
# --------------------------------------------------------------------------- #
def _policy_kernel(xT_ref, w1T_ref, b1_ref, whT_ref, bh_ref, out_ref, *, a_dim):
    # Layer 1: (Hp, S) @ (S, tb) on the MXU, f32 accumulation, ReLU on the VPU.
    hT = jnp.dot(w1T_ref[...], xT_ref[...], preferred_element_type=jnp.float32)
    hT = jnp.maximum(hT + b1_ref[...], 0.0)

    # Fused heads: (R, Hp) @ (Hp, tb) -> (R, tb).  R = 8 sublanes, lane-dense.
    zT = jnp.dot(whT_ref[...], hT, preferred_element_type=jnp.float32)
    zT = zT + bh_ref[...]

    # Rows [0, A): mu = 2*tanh(z).  Rows [A, R): std = softplus(z) (stable form).
    # z^T is only a handful of vregs, so compute-both-then-select is cheap.
    row = jax.lax.broadcasted_iota(jnp.int32, zT.shape, dimension=0)
    out_ref[...] = jnp.where(row < a_dim, 2.0 * jnp.tanh(zT),
                             jnp.logaddexp(zT, 0.0))


# --------------------------------------------------------------------------- #
# VMEM budgeting / batch-tile selection
# --------------------------------------------------------------------------- #
def _default_vmem_cap_bytes():
    """Physical-VMEM-aware scoped-VMEM cap, leaving headroom for compiler scratch."""
    try:
        phys = int(getattr(pltpu.get_tpu_info(), "vmem_capacity_bytes", 64 << 20))
    except Exception:  # non-TPU tracing / interpret mode
        phys = 64 << 20
    # 128 MiB (v5e/v6e) -> 112 MiB cap; 64 MiB (v7x per-TC) -> 48 MiB cap.
    return max(32 << 20, phys - (16 << 20))


def _tile_bytes(tb, hp, out_rows, state_dim):
    """Approx VMEM footprint of one grid step (double-buffered I/O blocks,
    resident weights/biases, hT/zT intermediates)."""
    return (2 * state_dim * tb * 4                                   # xT blocks
            + 2 * out_rows * tb * 4                                  # out blocks
            + 2 * (hp * state_dim + out_rows * hp + hp + out_rows) * 4  # weights+biases
            + 3 * hp * tb * 4)                                       # hT / zT / temps


def _choose_batch_tile(bp, hp, out_rows, state_dim, vmem_cap):
    tb = bp
    # For large batches keep >= 2 grid steps so the "parallel" axis can feed
    # both TensorCores on v7x; negligible cost on single-TC v5e/v6e.
    if bp >= 1024:
        tb = _round_up(pl.cdiv(bp, 2), 128)
    while _tile_bytes(tb, hp, out_rows, state_dim) > vmem_cap and tb > 128:
        tb = _round_up(pl.cdiv(tb, 2), 128)
    return tb


# --------------------------------------------------------------------------- #
# One-time parameter packing (hoisted out of the per-call path)
# --------------------------------------------------------------------------- #
def prepare_params(params):
    """Pad hidden to a lane multiple, transpose for the batch-on-lanes dataflow,
    and fuse the mu/std heads.  Call once, reuse across forward calls."""
    state_dim, hidden_dim = params["w1"].shape
    action_dim = params["wmu"].shape[1]
    hp = _round_up(hidden_dim, 128)
    out_rows = _round_up(2 * action_dim, 8)

    w1T = jnp.zeros((hp, state_dim), jnp.float32).at[:hidden_dim, :].set(params["w1"].T)
    b1 = jnp.zeros((hp, 1), jnp.float32).at[:hidden_dim, 0].set(params["b1"].reshape(-1))

    whT = jnp.zeros((out_rows, hp), jnp.float32)
    whT = whT.at[:action_dim, :hidden_dim].set(params["wmu"].T)
    whT = whT.at[action_dim:2 * action_dim, :hidden_dim].set(params["wstd"].T)
    bh = jnp.zeros((out_rows, 1), jnp.float32)
    bh = bh.at[:action_dim, 0].set(params["bmu"].reshape(-1))
    bh = bh.at[action_dim:2 * action_dim, 0].set(params["bstd"].reshape(-1))

    return {"w1T": w1T, "b1": b1, "whT": whT, "bh": bh}


# --------------------------------------------------------------------------- #
# Forward
# --------------------------------------------------------------------------- #
def policy_net_continuous(x, packed, action_dim, *, vmem_cap_bytes=None):
    """x: (B, state_dim) f32.  packed: output of prepare_params.
    Returns (mu, std), each (B, action_dim) f32."""
    B, state_dim = x.shape
    w1T, b1, whT, bh = packed["w1T"], packed["b1"], packed["whT"], packed["bh"]
    hp = w1T.shape[0]
    out_rows = whT.shape[0]
    assert w1T.shape[1] == state_dim

    # Batch-on-lanes layout: pad B to a lane multiple and transpose (layout
    # plumbing only; padded columns are zero and sliced away below).
    bp = _round_up(B, 128)
    xT = jnp.zeros((state_dim, bp), jnp.float32).at[:, :B].set(x.T.astype(jnp.float32))

    vmem_cap = vmem_cap_bytes or _default_vmem_cap_bytes()
    tb = _choose_batch_tile(bp, hp, out_rows, state_dim, vmem_cap)
    n_b = pl.cdiv(bp, tb)
    vmem_limit = int(min(vmem_cap,
                         max(8 << 20, 2 * _tile_bytes(tb, hp, out_rows, state_dim))))

    out = pl.pallas_call(
        functools.partial(_policy_kernel, a_dim=action_dim),
        out_shape=jax.ShapeDtypeStruct((out_rows, bp), jnp.float32),
        grid=(n_b,),
        in_specs=[
            pl.BlockSpec((state_dim, tb), lambda i: (0, i)),   # xT: tiled over batch lanes
            pl.BlockSpec((hp, state_dim), lambda i: (0, 0)),   # w1T: VMEM-resident
            pl.BlockSpec((hp, 1), lambda i: (0, 0)),           # b1
            pl.BlockSpec((out_rows, hp), lambda i: (0, 0)),    # fused head weights
            pl.BlockSpec((out_rows, 1), lambda i: (0, 0)),     # fused head biases
        ],
        out_specs=pl.BlockSpec((out_rows, tb), lambda i: (0, i)),
        compiler_params=pltpu.CompilerParams(
            dimension_semantics=("parallel",),
            vmem_limit_bytes=vmem_limit,
        ),
    )(xT, w1T, b1, whT, bh)

    mu = out[:action_dim, :B].T
    std = out[action_dim:2 * action_dim, :B].T
    return mu, std


# --------------------------------------------------------------------------- #
# torch.nn.Linear-style params + pure-JAX reference
# --------------------------------------------------------------------------- #
def init_params(key, state_dim, hidden_dim, action_dim):
    """U[-1/sqrt(fan_in), 1/sqrt(fan_in)] init; weights stored as (in, out) = W^T."""
    ks = jax.random.split(key, 6)

    def lin(kw, kb, fan_in, fan_out):
        bound = 1.0 / jnp.sqrt(fan_in)
        w = jax.random.uniform(kw, (fan_in, fan_out), jnp.float32, -bound, bound)
        b = jax.random.uniform(kb, (1, fan_out), jnp.float32, -bound, bound)
        return w, b

    w1, b1 = lin(ks[0], ks[1], state_dim, hidden_dim)
    wmu, bmu = lin(ks[2], ks[3], hidden_dim, action_dim)
    wstd, bstd = lin(ks[4], ks[5], hidden_dim, action_dim)
    return {"w1": w1, "b1": b1, "wmu": wmu, "bmu": bmu, "wstd": wstd, "bstd": bstd}


def _reference(x, p):
    h = jax.nn.relu(x @ p["w1"] + p["b1"])
    mu = 2.0 * jnp.tanh(h @ p["wmu"] + p["bmu"])
    std = jax.nn.softplus(h @ p["wstd"] + p["bstd"])
    return mu, std


if __name__ == "__main__":
    key = jax.random.PRNGKey(0)
    k_x, k_p = jax.random.split(key)

    batch, state_dim, hidden_dim, action_dim = 8, 4, 32, 2
    x = jax.random.normal(k_x, (batch, state_dim), jnp.float32)
    params = init_params(k_p, state_dim, hidden_dim, action_dim)

    packed = prepare_params(params)                     # one-time packing
    fwd = jax.jit(functools.partial(policy_net_continuous, action_dim=action_dim))
    mu, std = fwd(x, packed)
    jax.block_until_ready((mu, std))

    mu_ref, std_ref = _reference(x, params)
    assert mu.shape == (batch, action_dim) and std.shape == (batch, action_dim)
    assert jnp.allclose(mu, mu_ref, atol=1e-5, rtol=1e-5)
    assert jnp.allclose(std, std_ref, atol=1e-5, rtol=1e-5)

    print("KERNEL_OK")
</pallas_src>

<mosaic_0001>
module attributes {stable_mosaic.version = 11 : i64} {
  func.func @_policy_kernel(%arg0: i32, %arg1: memref<4x128xf32, #tpu.memory_space<vmem>>, %arg2: memref<128x4xf32, #tpu.memory_space<vmem>>, %arg3: memref<128x1xf32, #tpu.memory_space<vmem>>, %arg4: memref<8x128xf32, #tpu.memory_space<vmem>>, %arg5: memref<8x1xf32, #tpu.memory_space<vmem>>, %arg6: memref<8x128xf32, #tpu.memory_space<vmem>>) attributes {dimension_semantics = [#tpu.dimension_semantics<parallel>], iteration_bounds = array<i64: 1>, scalar_prefetch = 0 : i64, scratch_operands = 0 : i64, tpu.core_type = #tpu.core_type<tc>, window_params = [{transform_indices = @transform_0, window_bounds = array<i64: 4, 128>}, {pipeline_mode = #tpu.pipeline_mode<synchronous>, transform_indices = @transform_1, window_bounds = array<i64: 128, 4>}, {pipeline_mode = #tpu.pipeline_mode<synchronous>, transform_indices = @transform_2, window_bounds = array<i64: 128, 1>}, {pipeline_mode = #tpu.pipeline_mode<synchronous>, transform_indices = @transform_3, window_bounds = array<i64: 8, 128>}, {pipeline_mode = #tpu.pipeline_mode<synchronous>, transform_indices = @transform_4, window_bounds = array<i64: 8, 1>}, {transform_indices = @transform_5, window_bounds = array<i64: 8, 128>}]} {
    %c0 = arith.constant 0 : index
    %c0_0 = arith.constant 0 : index
    %0 = vector.load %arg2[%c0, %c0_0] : memref<128x4xf32, #tpu.memory_space<vmem>>, vector<128x4xf32>
    %c0_1 = arith.constant 0 : index
    %c0_2 = arith.constant 0 : index
    %1 = vector.load %arg1[%c0_1, %c0_2] : memref<4x128xf32, #tpu.memory_space<vmem>>, vector<4x128xf32>
    %cst = arith.constant dense<0.000000e+00> : vector<128x128xf32>
    %2 = tpu.matmul %0, %1, %cst {dimension_numbers = #tpu.dot_dimension_numbers<[1], [0], [0], [1], [0, 0, 1, 1], [], []>} : vector<128x4xf32>, vector<4x128xf32>, vector<128x128xf32> -> vector<128x128xf32>
    %c0_3 = arith.constant 0 : index
    %c0_4 = arith.constant 0 : index
    %3 = vector.load %arg3[%c0_3, %c0_4] : memref<128x1xf32, #tpu.memory_space<vmem>>, vector<128x1xf32>
    %4 = vector.broadcast %3 : vector<128x1xf32> to vector<128x128xf32>
    %5 = arith.addf %2, %4 : vector<128x128xf32>
    %cst_5 = arith.constant 0.000000e+00 : f32
    %6 = vector.broadcast %cst_5 : f32 to vector<128x128xf32>
    %7 = arith.maximumf %5, %6 : vector<128x128xf32>
    %c0_6 = arith.constant 0 : index
    %c0_7 = arith.constant 0 : index
    %8 = vector.load %arg4[%c0_6, %c0_7] : memref<8x128xf32, #tpu.memory_space<vmem>>, vector<8x128xf32>
    %cst_8 = arith.constant dense<0.000000e+00> : vector<8x128xf32>
    %9 = tpu.matmul %8, %7, %cst_8 {dimension_numbers = #tpu.dot_dimension_numbers<[1], [0], [0], [1], [0, 0, 1, 1], [], []>} : vector<8x128xf32>, vector<128x128xf32>, vector<8x128xf32> -> vector<8x128xf32>
    %c0_9 = arith.constant 0 : index
    %c0_10 = arith.constant 0 : index
    %10 = vector.load %arg5[%c0_9, %c0_10] : memref<8x1xf32, #tpu.memory_space<vmem>>, vector<8x1xf32>
    %11 = vector.broadcast %10 : vector<8x1xf32> to vector<8x128xf32>
    %12 = arith.addf %9, %11 : vector<8x128xf32>
    %13 = tpu.iota {dimensions = array<i32: 0>} : vector<8x128xi32>
    %c2_i32 = arith.constant 2 : i32
    %14 = vector.broadcast %c2_i32 : i32 to vector<8x128xi32>
    %15 = arith.cmpi slt, %13, %14 : vector<8x128xi32>
    %16 = math.tanh %12 : vector<8x128xf32>
    %cst_11 = arith.constant 2.000000e+00 : f32
    %17 = vector.broadcast %cst_11 : f32 to vector<8x128xf32>
    %18 = arith.mulf %17, %16 : vector<8x128xf32>
    %cst_12 = arith.constant 0.000000e+00 : f32
    %19 = vector.broadcast %cst_12 : f32 to vector<8x128xf32>
    %20 = arith.maximumf %12, %19 : vector<8x128xf32>
    %21 = vector.broadcast %cst_12 : f32 to vector<8x128xf32>
    %22 = arith.subf %12, %21 : vector<8x128xf32>
    %23 = arith.cmpf one, %22, %22 : vector<8x128xf32>
    %24 = vector.broadcast %cst_12 : f32 to vector<8x128xf32>
    %25 = arith.addf %12, %24 : vector<8x128xf32>
    %26 = math.absf %22 : vector<8x128xf32>
    %cst_13 = arith.constant 0.000000e+00 : f32
    %27 = vector.broadcast %cst_13 : f32 to vector<8x128xf32>
    %28 = arith.subf %27, %26 : vector<8x128xf32>
    %29 = math.exp %28 : vector<8x128xf32>
    %30 = math.log1p %29 : vector<8x128xf32>
    %31 = arith.addf %20, %30 : vector<8x128xf32>
    %32 = arith.select %23, %25, %31 : vector<8x128xi1>, vector<8x128xf32>
    %33 = arith.select %15, %18, %32 : vector<8x128xi1>, vector<8x128xf32>
    %c0_14 = arith.constant 0 : index
    %c0_15 = arith.constant 0 : index
    %34 = vector.load %arg6[%c0_14, %c0_15] : memref<8x128xf32, #tpu.memory_space<vmem>>, vector<8x128xf32>
    tpu.vector_store %arg6[%c0_14, %c0_15], %33 {strides = array<i32>} : memref<8x128xf32, #tpu.memory_space<vmem>>, vector<8x128xf32>,
    return
  }
  func.func @transform_0(%arg0: i32) -> (i32, i32) {
    %c0_i32 = arith.constant 0 : i32
    %c0_i32_0 = arith.constant 0 : i32
    return %c0_i32, %arg0 : i32, i32
  }
  func.func @transform_1(%arg0: i32) -> (i32, i32) {
    %c0_i32 = arith.constant 0 : i32
    %c0_i32_0 = arith.constant 0 : i32
    %c0_i32_1 = arith.constant 0 : i32
    return %c0_i32, %c0_i32_0 : i32, i32
  }
  func.func @transform_2(%arg0: i32) -> (i32, i32) {
    %c0_i32 = arith.constant 0 : i32
    %c0_i32_0 = arith.constant 0 : i32
    %c0_i32_1 = arith.constant 0 : i32
    return %c0_i32, %c0_i32_0 : i32, i32
  }
  func.func @transform_3(%arg0: i32) -> (i32, i32) {
    %c0_i32 = arith.constant 0 : i32
    %c0_i32_0 = arith.constant 0 : i32
    %c0_i32_1 = arith.constant 0 : i32
    return %c0_i32, %c0_i32_0 : i32, i32
  }
  func.func @transform_4(%arg0: i32) -> (i32, i32) {
    %c0_i32 = arith.constant 0 : i32
    %c0_i32_0 = arith.constant 0 : i32
    %c0_i32_1 = arith.constant 0 : i32
    return %c0_i32, %c0_i32_0 : i32, i32
  }
  func.func @transform_5(%arg0: i32) -> (i32, i32) {
    %c0_i32 = arith.constant 0 : i32
    %c0_i32_0 = arith.constant 0 : i32
    return %c0_i32, %arg0 : i32, i32
  }
}

</mosaic_0001>

<bundles_post_ra>
// kernel: policy_net_continuous.1
= control target key start
LH: loop header
LB: loop body
LE: loop exit
PB: predicated region body
PF: predicated region fallthrough
CT: control target
= control target key end

     0   :  { %vm182_vm0 = vcmask 1043456   ;;  %vm133_vm1 = vcmask 31744   ;;  %v576_v3 = vmov 0   ;;  %v577_v35 = vmov 0.0   ;;  %s762_s0 = inlined_call_operand.vmem [shape: f32[4,128], index: 0, kind: input, shape index: {}]   ;;  %s763_s1 = inlined_call_operand.vmem [shape: f32[128,4], index: 1, kind: input, shape index: {}]   ;;  %s764_s2 = inlined_call_operand.vmem [shape: f32[128,1], index: 2, kind: input, shape index: {}]   ;;  %s765_s4 = inlined_call_operand.vmem [shape: f32[8,1], index: 4, kind: input, shape index: {}]   ;;  %s766_s3 = inlined_call_operand.vmem [shape: f32[8,128], index: 3, kind: input, shape index: {}]   ;;  %s767_s5 = inlined_call_operand.vmem [shape: f32[8,128], index: 5, kind: output, shape index: {}]  }
   0x1   :  { %v36_v0 = vld [vmem:[%s762_s0] sm:$0xf]  ;;  %v21_v2 = vld [vmem:[%s763_s1 + $0x8] sm:$0xff]  ;;  %568 = vset.pattern.permute.xlu0 %v576_v3  ;;  %569 = vset.pattern.permute.xlu1 %v576_v3  ;;  %v22_v4 = vld [vmem:[%s763_s1 + $0x10] sm:$0xff]  ;;  %vm578_vm2 = vmmov 0  }
   0x2   :  { %v20_v1 = vld [vmem:[%s763_s1] sm:$0xff]  ;;  %504 = vmatprep.subr.msk.mxu0 %vm182_vm0, %v36_v0  ;;  %v23_v5 = vld [vmem:[%s763_s1 + $0x18] sm:$0xff]  ;;  %v50_v8 = vld [vmem:[%s764_s2 + $0x68] sm:$0xff]  ;;  %530 = vmatprep.subr.mxu1 %v577_v35 }
   0x3   :  { %506 = vmatprep.mubr.msk.f32.mxu0 %vm133_vm1, %v20_v1  ;;  %505 = vmatpush3.msk.msra.mxu0 %vm182_vm0, %v36_v0  ;;  %v24_v6 = vld [vmem:[%s763_s1 + $0x20] sm:$0xff]  ;;  %v52_v7 = vld [vmem:[%s764_s2 + $0x78] sm:$0xff]  ;;  %v51_v9 = vld [vmem:[%s764_s2 + $0x70] sm:$0xff] }
   0x4   :  { %507 = vmatmul.mubr.msk.f32.vlgmr.msra.gmra.mxu0 %vm133_vm1, %v21_v2  ;;  %130 = vperm.xlu0 %568, %v52_v7   ;;  %v25_v10 = vld [vmem:[%s763_s1 + $0x28] sm:$0xff]  ;;  %v49_v11 = vld [vmem:[%s764_s2 + $0x60] sm:$0xff]  ;;  %v26_v12 = vld [vmem:[%s763_s1 + $0x30] sm:$0xff] }
   0x5   :  { %509 = vmatprep.mubr.msk.f32.mxu0 %vm133_vm1, %v22_v4  ;;  %120 = vperm.xlu1 %569, %v50_v8   ;;  %v48_v13 = vld [vmem:[%s764_s2 + $0x58] sm:$0xff]  ;;  %v47_v15 = vld [vmem:[%s764_s2 + $0x50] sm:$0xff]  ;;  %v28_v16 = vld [vmem:[%s763_s1 + $0x40] sm:$0xff] }
   0x6   :  { %v27_v14 = vld [vmem:[%s763_s1 + $0x38] sm:$0xff]  ;;  %v46_v17 = vld [vmem:[%s764_s2 + $0x48] sm:$0xff]  ;;  %v45_v19 = vld [vmem:[%s764_s2 + $0x40] sm:$0xff]  ;;  %562 = vmatprep.mubr.msk.f32.mxu1 %vm578_vm2, %v577_v35 }
   0x7   :  { %v29_v18 = vld [vmem:[%s763_s1 + $0x48] sm:$0xff]  ;;  %v30_v20 = vld [vmem:[%s763_s1 + $0x50] sm:$0xff]  ;;  %v44_v21 = vld [vmem:[%s764_s2 + $0x38] sm:$0xff] }
   0x8   :  { %510 = vmatmul.mubr.msk.f32.gmra.mxu0 %vm133_vm1, %v23_v5  ;;  %125 = vperm.xlu0 %568, %v51_v9   ;;  %v31_v22 = vld [vmem:[%s763_s1 + $0x58] sm:$0xff]  ;;  %v43_v23 = vld [vmem:[%s764_s2 + $0x30] sm:$0xff]  ;;  %v32_v24 = vld [vmem:[%s763_s1 + $0x60] sm:$0xff] }
   0x9   :  { %512 = vmatprep.mubr.msk.f32.mxu0 %vm133_vm1, %v24_v6  ;;  %115 = vperm.xlu1 %569, %v49_v11   ;;  %v42_v25 = vld [vmem:[%s764_s2 + $0x28] sm:$0xff]  ;;  %v41_v27 = vld [vmem:[%s764_s2 + $0x20] sm:$0xff]  ;;  %v34_v28 = vld [vmem:[%s763_s1 + $0x70] sm:$0xff] }
   0xa   :  { %v33_v26 = vld [vmem:[%s763_s1 + $0x68] sm:$0xff]  ;;  %v40_v29 = vld [vmem:[%s764_s2 + $0x18] sm:$0xff]  ;;  %v39_v31 = vld [vmem:[%s764_s2 + $0x10] sm:$0xff] }
   0xb   :  { %v35_v30 = vld [vmem:[%s763_s1 + $0x78] sm:$0xff]  ;;  %v38_v32 = vld [vmem:[%s764_s2 + $0x8] sm:$0xff]  ;;  %v37_v33 = vld [vmem:[%s764_s2] sm:$0xff] }
   0xc   :  { %513 = vmatmul.mubr.msk.f32.gmra.mxu0 %vm133_vm1, %v25_v10  ;;  %110 = vperm.xlu0 %568, %v48_v13   ;;  %v348_v34 = vld [vmem:[%s765_s4] sm:$0xff] }
   0xd   :  { %515 = vmatprep.mubr.msk.f32.mxu0 %vm133_vm1, %v26_v12  ;;  %105 = vperm.xlu1 %569, %v47_v15  }
  0x10   :  { %516 = vmatmul.mubr.msk.f32.gmra.mxu0 %vm133_vm1, %v27_v14  ;;  %100 = vperm.xlu0 %568, %v46_v17  }
  0x11   :  { %518 = vmatprep.mubr.msk.f32.mxu0 %vm133_vm1, %v28_v16  ;;  %95 = vperm.xlu1 %569, %v45_v19  }
  0x14   :  { %519 = vmatmul.mubr.msk.f32.gmra.mxu0 %vm133_vm1, %v29_v18  ;;  %90 = vperm.xlu0 %568, %v44_v21  }
  0x15   :  { %521 = vmatprep.mubr.msk.f32.mxu0 %vm133_vm1, %v30_v20  ;;  %85 = vperm.xlu1 %569, %v43_v23  }
  0x18   :  { %522 = vmatmul.mubr.msk.f32.gmra.mxu0 %vm133_vm1, %v31_v22  ;;  %80 = vperm.xlu0 %568, %v42_v25  }
  0x19   :  { %524 = vmatprep.mubr.msk.f32.mxu0 %vm133_vm1, %v32_v24  ;;  %75 = vperm.xlu1 %569, %v41_v27  }
  0x1c   :  { %525 = vmatmul.mubr.msk.f32.gmra.mxu0 %vm133_vm1, %v33_v26  ;;  %70 = vperm.xlu0 %568, %v40_v29  }
  0x1d   :  { %527 = vmatprep.mubr.msk.f32.mxu0 %vm133_vm1, %v34_v28  ;;  %65 = vperm.xlu1 %569, %v39_v31  }
  0x20   :  { %528 = vmatmul.mubr.msk.f32.gmra.mxu0 %vm133_vm1, %v35_v30  ;;  %60 = vperm.xlu0 %568, %v38_v32  }
  0x21   :  { %55 = vperm.xlu1 %569, %v37_v33  }
  0x24   :  { %351 = vperm.xlu0 %568, %v348_v34  }
  0x7f   :  { %v131_v41 = vpop.permute.xlu0 %130 }
  0x80   :  { %v121_v43 = vpop.permute.xlu1 %120 }
  0x83   :  { %v126_v46 = vpop.permute.xlu0 %125 }
  0x84   :  { %v116_v48 = vpop.permute.xlu1 %115 }
  0x87   :  { %v111_v51 = vpop.permute.xlu0 %110 }
  0x88   :  { %v106_v53 = vpop.permute.xlu1 %105 }
  0x8b   :  { %v101_v56 = vpop.permute.xlu0 %100 }
  0x8c   :  { %v96_v59 = vpop.permute.xlu1 %95 }
  0x8f   :  { %v91_v2 = vpop.permute.xlu0 %90 }
  0x90   :  { %v86_v5 = vpop.permute.xlu1 %85 }
  0x93   :  { %v81_v10 = vpop.permute.xlu0 %80 }
  0x94   :  { %v76_v13 = vpop.permute.xlu1 %75 }
  0x97   :  { %v71_v18 = vpop.permute.xlu0 %70 }
  0x98   :  { %v66_v21 = vpop.permute.xlu1 %65 }
  0x9b   :  { %v61_v26 = vpop.permute.xlu0 %60 }
  0x9c   :  { %v56_v29 = vpop.permute.xlu1 %55 }
  0xc4   :  { %v729_v36 = vpop.f32.mrf.mxu0 }
  0xc5   :  { %v258_v30 = vadd.f32 %v729_v36, %v61_v26  ;;  %v347_v36 = vld [vmem:[%s766_s3] sm:$0xff] }
  0xc6   :  { %v731_v37 = vpop.f32.mrf.mxu0 }
  0xc7   :  { %v253_v32 = vadd.f32 %v731_v37, %v56_v29  ;;  %v332_v34 = vmax.f32 %v258_v30, 0.0 }
  0xc8   :  { %v733_v38 = vpop.f32.mrf.mxu0 }
  0xc9   :  { %v268_v24 = vadd.f32 %v733_v38, %v71_v18  ;;  %v331_v38 = vmax.f32 %v253_v32, 0.0 }
  0xca   :  { %v735_v39 = vpop.f32.mrf.mxu0 }
  0xcb   :  { %v263_v27 = vadd.f32 %v735_v39, %v66_v21  ;;  %v334_v31 = vmax.f32 %v268_v24, 0.0  ;;  %v352_v39 = vpop.permute.xlu0 %351 }
  0xcc   :  { %v514_v40 = vpop.f32.mrf.mxu0 }
  0xcd   :  { %v278_v19 = vadd.f32 %v514_v40, %v81_v10  ;;  %v333_v33 = vmax.f32 %v263_v27, 0.0 }
  0xce   :  { %v272_v42 = vpop.f32.mrf.mxu0 }
  0xcf   :  { %v273_v22 = vadd.f32 %v272_v42, %v76_v13  ;;  %v336_v25 = vmax.f32 %v278_v19, 0.0 }
  0xd0   :  { %v517_v44 = vpop.f32.mrf.mxu0 }
  0xd1   :  { %v288_v14 = vadd.f32 %v517_v44, %v91_v2  ;;  %v335_v28 = vmax.f32 %v273_v22, 0.0 }
  0xd2   :  { %v282_v45 = vpop.f32.mrf.mxu0 }
  0xd3   :  { %v283_v16 = vadd.f32 %v282_v45, %v86_v5  ;;  %v338_v20 = vmax.f32 %v288_v14, 0.0 }
  0xd4   :  { %v520_v47 = vpop.f32.mrf.mxu0 }
  0xd5   :  { %v298_v8 = vadd.f32 %v520_v47, %v101_v56  ;;  %v337_v23 = vmax.f32 %v283_v16, 0.0 }
  0xd6   :  { %v292_v49 = vpop.f32.mrf.mxu0 }
  0xd7   :  { %v293_v11 = vadd.f32 %v292_v49, %v96_v59  ;;  %v340_v15 = vmax.f32 %v298_v8, 0.0 }
  0xd8   :  { %v523_v50 = vpop.f32.mrf.mxu0 }
  0xd9   :  { %v308_v3 = vadd.f32 %v523_v50, %v111_v51  ;;  %v339_v17 = vmax.f32 %v293_v11, 0.0 }
  0xda   :  { %v302_v52 = vpop.f32.mrf.mxu0 }
  0xdb   :  { %v303_v6 = vadd.f32 %v302_v52, %v106_v53  ;;  %v342_v9 = vmax.f32 %v308_v3, 0.0 }
  0xdc   :  { %v526_v54 = vpop.f32.mrf.mxu0 }
  0xdd   :  { %v318_v61 = vadd.f32 %v526_v54, %v121_v43  ;;  %v341_v12 = vmax.f32 %v303_v6, 0.0 }
  0xde   :  { %v312_v55 = vpop.f32.mrf.mxu0 }
  0xdf   :  { %v313_v0 = vadd.f32 %v312_v55, %v116_v48  ;;  %v344_v4 = vmax.f32 %v318_v61, 0.0  ;;  %v424_v48 = vlaneseq }
  0xe0   :  { %v529_v57 = vpop.f32.mrf.mxu0 }
  0xe1   :  { %v328_v58 = vadd.f32 %v529_v57, %v131_v41  ;;  %v343_v7 = vmax.f32 %v313_v0, 0.0 }
  0xe2   :  { %v322_v60 = vpop.f32.mrf.mxu0 }
  0xe3   :  { %v346_v62 = vmax.f32 %v328_v58, 0.0  ;;  %v323_v63 = vadd.f32 %v322_v60, %v126_v46 }
  0xe5   :  { %v345_v1 = vmax.f32 %v323_v63, 0.0  ;;  %531 = vmatpush3.msra.mxu1 %v346_v62 }
  0xe6   :  { %532 = vmatprep.subr.mxu1 %v577_v35 }
  0xe7   :  { %533 = vmatpush3.msra.mxu1 %v345_v1 }
  0xe8   :  { %534 = vmatprep.subr.mxu1 %v577_v35 }
  0xe9   :  { %535 = vmatpush3.msra.mxu1 %v344_v4 }
  0xea   :  { %536 = vmatprep.subr.mxu1 %v577_v35 }
  0xeb   :  { %537 = vmatpush3.msra.mxu1 %v343_v7 }
  0xec   :  { %538 = vmatprep.subr.mxu1 %v577_v35 }
  0xed   :  { %539 = vmatpush3.msra.mxu1 %v342_v9 }
  0xee   :  { %540 = vmatprep.subr.mxu1 %v577_v35 }
  0xef   :  { %541 = vmatpush3.msra.mxu1 %v341_v12 }
  0xf0   :  { %542 = vmatprep.subr.mxu1 %v577_v35 }
  0xf1   :  { %543 = vmatpush3.msra.mxu1 %v340_v15 }
  0xf2   :  { %544 = vmatprep.subr.mxu1 %v577_v35 }
  0xf3   :  { %545 = vmatpush3.msra.mxu1 %v339_v17 }
  0xf4   :  { %546 = vmatprep.subr.mxu1 %v577_v35 }
  0xf5   :  { %547 = vmatpush3.msra.mxu1 %v338_v20 }
  0xf6   :  { %548 = vmatprep.subr.mxu1 %v577_v35 }
  0xf7   :  { %549 = vmatpush3.msra.mxu1 %v337_v23 }
  0xf8   :  { %550 = vmatprep.subr.mxu1 %v577_v35 }
  0xf9   :  { %551 = vmatpush3.msra.mxu1 %v336_v25 }
  0xfa   :  { %552 = vmatprep.subr.mxu1 %v577_v35 }
  0xfb   :  { %553 = vmatpush3.msra.mxu1 %v335_v28 }
  0xfc   :  { %554 = vmatprep.subr.mxu1 %v577_v35 }
  0xfd   :  { %555 = vmatpush3.msra.mxu1 %v334_v31 }
  0xfe   :  { %556 = vmatprep.subr.mxu1 %v577_v35 }
  0xff   :  { %557 = vmatpush3.msra.mxu1 %v333_v33 }
 0x100   :  { %558 = vmatprep.subr.mxu1 %v577_v35 }
 0x101   :  { %559 = vmatpush3.msra.mxu1 %v332_v34 }
 0x102   :  { %560 = vmatprep.subr.mxu1 %v577_v35  ;;  %v425_v35 = vshrl.u32 %v424_v48, 7 }
 0x103   :  { %561 = vmatpush3.msra.mxu1 %v331_v38 }
 0x104   :  { %563 = vmatmul.mubr.f32.vlgmr.msra.gmra.mxu1 %v347_v36  ;;  %vm426_vm4 = vcmp.lt.s32.totalorder %v425_v35, 2 }
 0x1c4   :  { %v420_v37 = vpop.f32.mrf.mxu1 }
 0x1c5   :  { %v421_v40 = vadd.f32 %v420_v37, %v352_v39 }
 0x1c6   :  { %v564_v41 = vpop.f32.mrf.mxu1 }
 0x1c7   :  { %v432_v42 = vand.u32 2147483647, %v421_v40  ;;  %v429_v55 = vmax.f32 %v421_v40, 0.0  ;;  %vm430_vm5 = vcmp.ne.f32.partialorder %v421_v40, %v421_v40 }
 0x1c9   :  { %v433_v43 = vsub.f32 0.0, %v432_v42 }
 0x1cb   :  { %v434_v44 = vmul.f32 1.442695, %v433_v43 }
 0x1cd   :  { %570 = vpow2.f32 %v434_v44 }
 0x1da   :  { %v571_v45 = vpop.eup %570 }
 0x1db   :  { %v436_v46 = vadd.f32 1.0, %v571_v45  ;;  %v439_v47 = vmul.f32 -0.5, %v571_v45  ;;  %v442_v50 = vand.u32 2147483647, %v571_v45 }
 0x1dd   :  { %572 = vlog2.f32 %v436_v46  ;;  %v440_v49 = vadd.f32 1.0, %v439_v47  ;;  %vm443_vm3 = vcmp.lt.f32.partialorder %v442_v50, 0.0004427343 }
 0x1de   :  { %574 = vtanh.f32 %v421_v40 }
 0x1df   :  { %v441_v53 = vmul.f32 %v571_v45, %v440_v49 }
 0x1ea   :  { %v573_v51 = vpop.eup %572 }
 0x1eb   :  { %v438_v52 = vmul.f32 0.6931472, %v573_v51  ;;  %v575_v54 = vpop.eup %574 }
 0x1ec   :  { %v428_v58 = vmul.f32 2.0, %v575_v54 }
 0x1ed   :  { %v444_v56 = vsel %vm443_vm3, %v441_v53, %v438_v52 }
 0x1ee   :  { %v445_v57 = vadd.f32 %v444_v56, %v429_v55 }
 0x1f0   :  { %v446_v59 = vsel %vm430_vm5, %v421_v40, %v445_v57 }
 0x1f1   :  { %v447_v60 = vsel %vm426_vm4, %v428_v58, %v446_v59 }
 0x1f2   :  { %448 = vst [vmem:[%s767_s5] sm:$0xff] %v447_v60 }

</bundles_post_ra>
